<compile_context>
chip_gen: v7x
topology: tpu7x:2x2x1
jax: 0.10.0
libtpu: 0.0.40
codegen_flags: <defaults>
</compile_context>

<pallas_src>
import functools

import jax
import jax.numpy as jnp
from jax import lax
from jax.experimental import pallas as pl
from jax.experimental.pallas import tpu as pltpu


def _conv_bn_relu_kernel(x_ref, w_ref, b_ref, o_ref, *, KH, KW, Wp, S, PF):
    """Single step, whole (tiny) problem resident in VMEM.

    x_ref: (B*C1, PF)           zero-padded input, one flat row per (batch, channel)
    w_ref: (B*C2, KH*KW*B*C1)   batch-block-diagonal, BN-scale-folded conv weights
    b_ref: (B*C2, 1)            folded BN bias (tiled over batch)
    o_ref: (B*C2, S)            channels-first flat output, S = H*Wp
    """
    xv = x_ref[...]                                  # load the whole input once

    # im2col: tap (i, j) of a stride-1 / dilation-1 conv is a flat shift of i*Wp + j
    # in the padded image.  Shift on the XLU via roll (instead of unaligned re-loads)
    # and keep the first S (128-aligned) columns.
    slabs = []
    for i in range(KH):
        for j in range(KW):
            off = i * Wp + j
            r = xv if off == 0 else pltpu.roll(xv, PF - off, axis=1)  # == shift by -off
            slabs.append(r[:, :S])                   # (B*C1, S)

    # All concat offsets are multiples of B*C1 = 8 sublanes -> aligned, in-register,
    # no scratch round-trip and no masked partial stores.
    patches = jnp.concatenate(slabs, axis=0)         # (KH*KW*B*C1, S)

    # One MXU contraction for BOTH batch elements (weights are block-diagonal in b).
    acc = jnp.dot(w_ref[...], patches, preferred_element_type=jnp.float32)

    # Folded-BN bias + ReLU, single dense (B*C2, S) store (unmasked vst).
    o_ref[...] = jnp.maximum(acc + b_ref[...], 0.0).astype(o_ref.dtype)


def conv_bn_relu(x_nchw, weight, gamma, beta, running_mean, running_var,
                 *, k=3, eps=1e-5):
    """Eval-mode Conv2d(bias=False, stride=1, groups=1, dilation=1) + BN + ReLU.

    x_nchw: (B, C1, H, W) f32.   weight: (C2, C1, k, k) as in torch Conv2d.
    """
    B, C1, H, W = x_nchw.shape
    C2, C1w, KH, KW = weight.shape
    assert C1w == C1 and KH == k and KW == k
    assert k % 2 == 1, "autopad 'same' flat-shift path assumes odd kernel size"
    # TODO(synk): stride>1 / dilation>1 / groups>1 and BatchNorm training-mode
    # (batch statistics) are not implemented; this matches the module's default
    # eval-mode configuration.
    pad = k // 2

    # Lane-friendly padded width: S = H*Wp must be a multiple of 128.
    Wp = W + 2 * pad
    while (H * Wp) % 128:
        Wp += 1
    S = H * Wp
    max_off = (k - 1) * Wp + (k - 1)                 # largest flat tap shift
    # Flat input length: >= S + max_off (all shifted reads stay in-bounds), a multiple
    # of 128 (lane aligned) and of Wp (so ONE spatial pad produces it directly).
    PF = pl.cdiv(S + max_off, 128) * 128
    while PF % Wp:
        PF += 128
    Hp_pad = PF // Wp                                # >= H + 2*pad by construction

    # ---- tiny wrapper glue (one XLA fusion): BN fold + batch-block-diag weights ----
    scale = (gamma / jnp.sqrt(running_var + eps)).astype(jnp.float32)      # (C2,)
    bias = (beta - running_mean * scale).astype(jnp.float32)               # (C2,)
    w_fold = weight.astype(jnp.float32) * scale[:, None, None, None]       # (C2,C1,k,k)
    w3 = jnp.transpose(w_fold, (0, 2, 3, 1)).reshape(C2, KH * KW, C1)      # (C2,kk,C1)
    # Block-diagonal over batch: Wbig[b*C2+o, t*(B*C1)+b'*C1+c] = w3[o,t,c] * (b==b')
    eye = jnp.eye(B, dtype=jnp.float32)
    w_big = jnp.einsum('ab,otc->aotbc', eye, w3).reshape(B * C2, KH * KW * B * C1)
    bias_big = jnp.tile(bias, B).reshape(B * C2, 1)

    # Single pad producing the flat, lane-aligned layout; the reshape is free.
    x_pad = jnp.pad(x_nchw.astype(jnp.float32),
                    ((0, 0), (0, 0), (pad, Hp_pad - H - pad), (pad, Wp - W - pad)))
    x_flat = x_pad.reshape(B * C1, PF)

    kernel = functools.partial(_conv_bn_relu_kernel,
                               KH=KH, KW=KW, Wp=Wp, S=S, PF=PF)

    out_flat = pl.pallas_call(
        kernel,
        out_shape=jax.ShapeDtypeStruct((B * C2, S), jnp.float32),
        grid_spec=pltpu.PrefetchScalarGridSpec(
            num_scalar_prefetch=0,
            grid=(1,),                               # batch fused into one step
            in_specs=[
                pl.BlockSpec((B * C1, PF), lambda i: (0, 0)),
                pl.BlockSpec((B * C2, KH * KW * B * C1), lambda i: (0, 0)),
                pl.BlockSpec((B * C2, 1), lambda i: (0, 0)),
            ],
            out_specs=pl.BlockSpec((B * C2, S), lambda i: (0, 0)),
        ),
        compiler_params=pltpu.CompilerParams(
            dimension_semantics=("arbitrary",)),
    )(x_flat, w_big, bias_big)

    # Free reshape + tiny slice dropping the (Wp - W) padded-width columns.
    return out_flat.reshape(B, C2, H, Wp)[:, :, :, :W]


def _reference(x_nchw, weight, gamma, beta, running_mean, running_var, *, k=3, eps=1e-5):
    """Pure-JAX reference (lax conv), NCHW, for the correctness check."""
    pad = k // 2
    y = lax.conv_general_dilated(
        x_nchw, weight, window_strides=(1, 1),
        padding=((pad, pad), (pad, pad)),
        dimension_numbers=("NCHW", "OIHW", "NCHW"))
    scale = gamma / jnp.sqrt(running_var + eps)
    bias = beta - running_mean * scale
    y = y * scale[None, :, None, None] + bias[None, :, None, None]
    return jnp.maximum(y, 0.0)


if __name__ == "__main__":
    key = jax.random.PRNGKey(0)
    k_x, k_w, k_g, k_b, k_m, k_v = jax.random.split(key, 6)

    B, C1, C2, H, W, K = 2, 4, 8, 16, 16, 3

    x = jax.random.normal(k_x, (B, C1, H, W), dtype=jnp.float32)
    weight = jax.random.normal(k_w, (C2, C1, K, K), dtype=jnp.float32) * 0.1
    gamma = 1.0 + 0.1 * jax.random.normal(k_g, (C2,), dtype=jnp.float32)
    beta = 0.1 * jax.random.normal(k_b, (C2,), dtype=jnp.float32)
    running_mean = 0.1 * jax.random.normal(k_m, (C2,), dtype=jnp.float32)
    running_var = 0.5 + jnp.abs(jax.random.normal(k_v, (C2,), dtype=jnp.float32))

    out = conv_bn_relu(x, weight, gamma, beta, running_mean, running_var, k=K)
    out = jax.block_until_ready(out)

    ref = _reference(x, weight, gamma, beta, running_mean, running_var, k=K)
    assert out.shape == (B, C2, H, W), out.shape
    assert jnp.allclose(out, ref, atol=1e-4, rtol=1e-4), float(jnp.max(jnp.abs(out - ref)))

    print("KERNEL_OK")
</pallas_src>

<mosaic_0001>
module attributes {stable_mosaic.version = 11 : i64} {
  func.func @_conv_bn_relu_kernel(%arg0: i32, %arg1: memref<8x768xf32, #tpu.memory_space<vmem>>, %arg2: memref<16x72xf32, #tpu.memory_space<vmem>>, %arg3: memref<16x1xf32, #tpu.memory_space<vmem>>, %arg4: memref<16x384xf32, #tpu.memory_space<vmem>>) attributes {dimension_semantics = [#tpu.dimension_semantics<arbitrary>], iteration_bounds = array<i64: 1>, scalar_prefetch = 0 : i64, scratch_operands = 0 : i64, tpu.core_type = #tpu.core_type<tc>, window_params = [{pipeline_mode = #tpu.pipeline_mode<synchronous>, transform_indices = @transform_0, window_bounds = array<i64: 8, 768>}, {pipeline_mode = #tpu.pipeline_mode<synchronous>, transform_indices = @transform_1, window_bounds = array<i64: 16, 72>}, {pipeline_mode = #tpu.pipeline_mode<synchronous>, transform_indices = @transform_2, window_bounds = array<i64: 16, 1>}, {pipeline_mode = #tpu.pipeline_mode<synchronous>, transform_indices = @transform_3, window_bounds = array<i64: 16, 384>}]} {
    %c0 = arith.constant 0 : index
    %c0_0 = arith.constant 0 : index
    %0 = vector.load %arg1[%c0, %c0_0] : memref<8x768xf32, #tpu.memory_space<vmem>>, vector<8x768xf32>
    %1 = vector.extract_strided_slice %0 {offsets = [0, 0], sizes = [8, 384], strides = [1, 1]} : vector<8x768xf32> to vector<8x384xf32>
    %c767_i32 = arith.constant 767 : i32
    %2 = tpu.dynamic_rotate %0 by %c767_i32 dim 1 : vector<8x768xf32>, i32 -> vector<8x768xf32>
    %3 = vector.extract_strided_slice %2 {offsets = [0, 0], sizes = [8, 384], strides = [1, 1]} : vector<8x768xf32> to vector<8x384xf32>
    %c766_i32 = arith.constant 766 : i32
    %4 = tpu.dynamic_rotate %0 by %c766_i32 dim 1 : vector<8x768xf32>, i32 -> vector<8x768xf32>
    %5 = vector.extract_strided_slice %4 {offsets = [0, 0], sizes = [8, 384], strides = [1, 1]} : vector<8x768xf32> to vector<8x384xf32>
    %c744_i32 = arith.constant 744 : i32
    %6 = tpu.dynamic_rotate %0 by %c744_i32 dim 1 : vector<8x768xf32>, i32 -> vector<8x768xf32>
    %7 = vector.extract_strided_slice %6 {offsets = [0, 0], sizes = [8, 384], strides = [1, 1]} : vector<8x768xf32> to vector<8x384xf32>
    %c743_i32 = arith.constant 743 : i32
    %8 = tpu.dynamic_rotate %0 by %c743_i32 dim 1 : vector<8x768xf32>, i32 -> vector<8x768xf32>
    %9 = vector.extract_strided_slice %8 {offsets = [0, 0], sizes = [8, 384], strides = [1, 1]} : vector<8x768xf32> to vector<8x384xf32>
    %c742_i32 = arith.constant 742 : i32
    %10 = tpu.dynamic_rotate %0 by %c742_i32 dim 1 : vector<8x768xf32>, i32 -> vector<8x768xf32>
    %11 = vector.extract_strided_slice %10 {offsets = [0, 0], sizes = [8, 384], strides = [1, 1]} : vector<8x768xf32> to vector<8x384xf32>
    %c720_i32 = arith.constant 720 : i32
    %12 = tpu.dynamic_rotate %0 by %c720_i32 dim 1 : vector<8x768xf32>, i32 -> vector<8x768xf32>
    %13 = vector.extract_strided_slice %12 {offsets = [0, 0], sizes = [8, 384], strides = [1, 1]} : vector<8x768xf32> to vector<8x384xf32>
    %c719_i32 = arith.constant 719 : i32
    %14 = tpu.dynamic_rotate %0 by %c719_i32 dim 1 : vector<8x768xf32>, i32 -> vector<8x768xf32>
    %15 = vector.extract_strided_slice %14 {offsets = [0, 0], sizes = [8, 384], strides = [1, 1]} : vector<8x768xf32> to vector<8x384xf32>
    %c718_i32 = arith.constant 718 : i32
    %16 = tpu.dynamic_rotate %0 by %c718_i32 dim 1 : vector<8x768xf32>, i32 -> vector<8x768xf32>
    %17 = vector.extract_strided_slice %16 {offsets = [0, 0], sizes = [8, 384], strides = [1, 1]} : vector<8x768xf32> to vector<8x384xf32>
    %18 = tpu.concatenate %1, %3, %5, %7, %9, %11, %13, %15, %17 in 0 : vector<8x384xf32>, vector<8x384xf32>, vector<8x384xf32>, vector<8x384xf32>, vector<8x384xf32>, vector<8x384xf32>, vector<8x384xf32>, vector<8x384xf32>, vector<8x384xf32> -> vector<72x384xf32>
    %c0_1 = arith.constant 0 : index
    %c0_2 = arith.constant 0 : index
    %19 = vector.load %arg2[%c0_1, %c0_2] : memref<16x72xf32, #tpu.memory_space<vmem>>, vector<16x72xf32>
    %cst = arith.constant dense<0.000000e+00> : vector<16x384xf32>
    %20 = tpu.matmul %19, %18, %cst {dimension_numbers = #tpu.dot_dimension_numbers<[1], [0], [0], [1], [0, 0, 1, 1], [], []>} : vector<16x72xf32>, vector<72x384xf32>, vector<16x384xf32> -> vector<16x384xf32>
    %c0_3 = arith.constant 0 : index
    %c0_4 = arith.constant 0 : index
    %21 = vector.load %arg3[%c0_3, %c0_4] : memref<16x1xf32, #tpu.memory_space<vmem>>, vector<16x1xf32>
    %22 = vector.broadcast %21 : vector<16x1xf32> to vector<16x384xf32>
    %23 = arith.addf %20, %22 : vector<16x384xf32>
    %cst_5 = arith.constant 0.000000e+00 : f32
    %24 = vector.broadcast %cst_5 : f32 to vector<16x384xf32>
    %25 = arith.maximumf %23, %24 : vector<16x384xf32>
    %c0_6 = arith.constant 0 : index
    %c0_7 = arith.constant 0 : index
    %26 = vector.load %arg4[%c0_6, %c0_7] : memref<16x384xf32, #tpu.memory_space<vmem>>, vector<16x384xf32>
    tpu.vector_store %arg4[%c0_6, %c0_7], %25 {strides = array<i32>} : memref<16x384xf32, #tpu.memory_space<vmem>>, vector<16x384xf32>,
    return
  }
  func.func @transform_0(%arg0: i32) -> (i32, i32) {
    %c0_i32 = arith.constant 0 : i32
    %c0_i32_0 = arith.constant 0 : i32
    %c0_i32_1 = arith.constant 0 : i32
    return %c0_i32, %c0_i32_0 : i32, i32
  }
  func.func @transform_1(%arg0: i32) -> (i32, i32) {
    %c0_i32 = arith.constant 0 : i32
    %c0_i32_0 = arith.constant 0 : i32
    %c0_i32_1 = arith.constant 0 : i32
    return %c0_i32, %c0_i32_0 : i32, i32
  }
  func.func @transform_2(%arg0: i32) -> (i32, i32) {
    %c0_i32 = arith.constant 0 : i32
    %c0_i32_0 = arith.constant 0 : i32
    %c0_i32_1 = arith.constant 0 : i32
    return %c0_i32, %c0_i32_0 : i32, i32
  }
  func.func @transform_3(%arg0: i32) -> (i32, i32) {
    %c0_i32 = arith.constant 0 : i32
    %c0_i32_0 = arith.constant 0 : i32
    %c0_i32_1 = arith.constant 0 : i32
    return %c0_i32, %c0_i32_0 : i32, i32
  }
}

</mosaic_0001>

<bundles_post_ra>
// kernel: tpu_custom_call.1
= control target key start
LH: loop header
LB: loop body
LE: loop exit
PB: predicated region body
PF: predicated region fallthrough
CT: control target
= control target key end

     0   :  { %8 = vsyncpa [#allocation3], 0  ;;  %s686_s0 = inlined_call_operand.hbm [shape: f32[8,768], index: 0, kind: input, shape index: {}]   ;;  %s687_s1 = inlined_call_operand.vmem [shape: f32[16,72], index: 1, kind: input, shape index: {}]   ;;  %s688_s2 = inlined_call_operand.vmem [shape: f32[16,1], index: 2, kind: input, shape index: {}]   ;;  %s689_s3 = inlined_call_operand.hbm [shape: f32[16,384], index: 3, kind: output, shape index: {}]  }
   0x1   :  { %9 = vsyncpa [#allocation4], 0  ;;  %s533_s12 = smov [#allocation2]   ;;  %s485_s16 = scalar_lea.hbm %s686_s0, 768 }
   0x2   :  { %s16_s13 = sshll.u32 %s533_s12, 4  ;;  %p486_p0 = scmp.ne.s32.totalorder %s686_s0, %s485_s16  ;;  %s17_s13 = int_to_ptr.vmem [resolvable:$true] %s16_s13 }
   0x3   :  { %p489_p1 = scmp.lt.u32.totalorder %s485_s16, %s686_s0 }
   0x5   :  { %p491_p2 = pnand %p489_p1, %p486_p0 }
   0x7   :  { %494 = shalt.err (!%p491_p2)
}
   0x8   :  { %s495_s21 = scalar_lea.vmem %s17_s13, 768  ;;  %p500_p4 = scmp.lt.s32.totalorder %s17_s13, %s17_s13 }
   0x9   :  { %p496_p3 = scmp.ne.s32.totalorder %s17_s13, %s495_s21  ;;  %p501_p5 = scmp.lt.s32.totalorder %s495_s21, %s495_s21 }
   0xb   :  { %p502_p6 = por %p501_p5, %p500_p4 }
   0xd   :  { %p503_p7 = pnand %p502_p6, %p496_p3 }
   0xf   :  { %506 = shalt.err (!%p503_p7)
}
  0x10   :  { %19 = dma.hbm_to_vmem [thread:$0]  %s686_s0, 768, %s17_s13, [#allocation3]  }
  0x11   :  { %529 = dma.done.wait [#allocation3], 768  }
  0x12   :  { %530 = vsyncadd [#allocation3], 4294966528  ;;  %v579_v0 = vld [vmem:[#allocation2 + $0x8] sm:$0xff]  ;;  %v581_v1 = vld [vmem:[#allocation2 + $0x10] sm:$0xff]  ;;  %s534_s24 = smov 126   ;;  %s535_s25 = smov 127   ;;  %v39_v11 = vlaneseq }
  0x13   :  { %v583_v2 = vld [vmem:[#allocation2] sm:$0xff]  ;;  %v423_v3 = vpack.i.bf16 %v581_v1, %v579_v0  ;;  %v30_v4 = vld [vmem:[#allocation2 + $0x18] sm:$0xff]  ;;  %s536_s26 = smov 104   ;;  %s537_s0 = smov 102   ;;  %vm143_vm0 = vcmask 588800   ;;  %v541_v7 = vmov 0.0  }
  0x14   :  { %v418_v5 = vpack.i.bf16 %v30_v4, %v583_v2  ;;  %s538_s27 = smov 103   ;;  %s539_s28 = smov 79   ;;  %v591_v6 = vld [vmem:[%s687_s1] sm:$0xff]  ;;  %214 = vmatprep.mubr.f32.mxu0 %v541_v7  ;;  %v542_v8 = vmov 0   ;;  %v132_v10 = vld [vmem:[%s688_s2 + $0x8] sm:$0xff]  ;;  %v605_v12 = vand.u32 127, %v39_v11 }
  0x15   :  { %424 = vrot.lane.b32.xlu1 %v423_v3, %s534_s24  ;;  %414 = vrot.lane.b32.xlu0 %v423_v3, %s535_s25  ;;  %s540_s29 = smov 80   ;;  %s543_s5 = smov 78   ;;  %v131_v9 = vld [vmem:[%s688_s2] sm:$0xff] }
  0x16   :  { %364 = vmatprep.mubr.msk.f32.mxu1 %vm143_vm0, %v591_v6  ;;  %483 = vset.pattern.permute.xlu0 %v542_v8  ;;  %vm41_vm1 = vcmp.lt.s32.totalorder %v605_v12, 127  ;;  %vm53_vm2 = vcmp.lt.s32.totalorder %v605_v12, 126  ;;  %vm65_vm3 = vcmp.lt.s32.totalorder %v605_v12, 104  ;;  %vm77_vm4 = vcmp.lt.s32.totalorder %v605_v12, 103 }
  0x17   :  { %484 = vset.pattern.permute.xlu1 %v542_v8  ;;  %vm89_vm5 = vcmp.lt.s32.totalorder %v605_v12, 102  ;;  %vm101_vm6 = vcmp.lt.s32.totalorder %v605_v12, 80  ;;  %vm113_vm7 = vcmp.lt.s32.totalorder %v605_v12, 79  ;;  %vm125_vm8 = vcmp.lt.s32.totalorder %v605_v12, 78 }
  0x19   :  { %429 = vrot.lane.b32.xlu1 %v423_v3, %s536_s26  ;;  %419 = vrot.lane.b32.xlu0 %v418_v5, %s535_s25 }
  0x1d   :  { %439 = vrot.lane.b32.xlu1 %v418_v5, %s536_s26  ;;  %434 = vrot.lane.b32.xlu0 %v418_v5, %s534_s24 }
  0x21   :  { %449 = vrot.lane.b32.xlu1 %v423_v3, %s537_s0  ;;  %444 = vrot.lane.b32.xlu0 %v423_v3, %s538_s27 }
  0x25   :  { %459 = vrot.lane.b32.xlu1 %v418_v5, %s537_s0  ;;  %454 = vrot.lane.b32.xlu0 %v418_v5, %s538_s27 }
  0x29   :  { %469 = vrot.lane.b32.xlu1 %v423_v3, %s539_s28  ;;  %464 = vrot.lane.b32.xlu0 %v423_v3, %s540_s29 }
  0x2d   :  { %479 = vrot.lane.b32.xlu1 %v418_v5, %s539_s28  ;;  %474 = vrot.lane.b32.xlu0 %v418_v5, %s540_s29 }
  0x31   :  { %121 = vrot.lane.b32.xlu1 %v581_v1, %s543_s5  ;;  %119 = vrot.lane.b32.xlu0 %v579_v0, %s543_s5 }
  0x35   :  { %123 = vrot.lane.b32.xlu1 %v30_v4, %s543_s5  ;;  %117 = vrot.lane.b32.xlu0 %v583_v2, %s543_s5 }
  0x39   :  { %135 = vperm.xlu0 %483, %v131_v9   ;;  %140 = vperm.xlu1 %484, %v132_v10  }
  0x87   :  { %v425_v13 = vpop.permute.xlu1 %424  ;;  %v415_v14 = vpop.permute.xlu0 %414 }
  0x88   :  { %v417_v15 = vunpack.i.h.bf16 %v415_v14  ;;  %v416_v16 = vunpack.i.l.bf16 %v415_v14  ;;  %v427_v17 = vunpack.i.h.bf16 %v425_v13  ;;  %v426_v18 = vunpack.i.l.bf16 %v425_v13 }
  0x8a   :  { %v43_v19 = vsel %vm41_vm1, %v416_v16, %v417_v15  ;;  %v55_v29 = vsel %vm53_vm2, %v426_v18, %v427_v17 }
  0x8b   :  { %v430_v20 = vpop.permute.xlu1 %429  ;;  %v420_v21 = vpop.permute.xlu0 %419  ;;  %v367_v22 = vpack.c.bf16 %v43_v19, %v579_v0 }
  0x8c   :  { %v432_v23 = vunpack.i.h.bf16 %v430_v20  ;;  %v431_v24 = vunpack.i.l.bf16 %v430_v20  ;;  %v422_v25 = vunpack.i.h.bf16 %v420_v21  ;;  %v421_v26 = vunpack.i.l.bf16 %v420_v21 }
  0x8d   :  { %368 = vmatprep.subr.bf16.mxu0 %v367_v22 }
  0x8e   :  { %v44_v27 = vsel %vm41_vm1, %v421_v26, %v416_v16  ;;  %v42_v28 = vsel %vm41_vm1, %v417_v15, %v422_v25  ;;  %v67_v30 = vsel %vm65_vm3, %v431_v24, %v432_v23 }
  0x8f   :  { %v440_v31 = vpop.permute.xlu1 %439  ;;  %v435_v32 = vpop.permute.xlu0 %434  ;;  %v369_v33 = vpack.c.bf16 %v44_v27, %v583_v2  ;;  %v383_v34 = vpack.c.bf16 %v42_v28, %v581_v1  ;;  %v371_v35 = vpack.c.bf16 %v67_v30, %v55_v29 }
  0x90   :  { %v442_v36 = vunpack.i.h.bf16 %v440_v31  ;;  %v441_v37 = vunpack.i.l.bf16 %v440_v31  ;;  %v437_v38 = vunpack.i.h.bf16 %v435_v32  ;;  %v436_v39 = vunpack.i.l.bf16 %v435_v32 }
  0x91   :  { %370 = vmatpush1.bf16.msra.mxu0 %v369_v33  ;;  %384 = vmatprep.subr.bf16.mxu1 %v383_v34 }
  0x92   :  { %372 = vmatprep.subr.bf16.mxu0 %v371_v35  ;;  %386 = vmatpush3.bf16.msra.mxu1 %v383_v34  ;;  %v56_v40 = vsel %vm53_vm2, %v436_v39, %v426_v18  ;;  %v68_v41 = vsel %vm65_vm3, %v441_v37, %v431_v24  ;;  %v54_v42 = vsel %vm53_vm2, %v427_v17, %v437_v38  ;;  %v130_v34 = vld [vmem:[%s687_s1 + $0x8] sm:$0xff]  ;;  %s544_s1 = smov [#allocation5]  }
  0x93   :  { %v450_v43 = vpop.permute.xlu1 %449  ;;  %v445_v44 = vpop.permute.xlu0 %444  ;;  %v373_v45 = vpack.c.bf16 %v68_v41, %v56_v40  ;;  %v66_v46 = vsel %vm65_vm3, %v432_v23, %v442_v36  ;;  %s319_s11 = sshll.u32 %s544_s1, 4  ;;  %s320_s11 = int_to_ptr.vmem [resolvable:$true] %s319_s11 }
  0x94   :  { %v452_v47 = vunpack.i.h.bf16 %v450_v43  ;;  %v451_v48 = vunpack.i.l.bf16 %v450_v43  ;;  %v447_v49 = vunpack.i.h.bf16 %v445_v44  ;;  %v446_v50 = vunpack.i.l.bf16 %v445_v44  ;;  %s507_s12 = scalar_lea.vmem %s320_s11, 768  ;;  %p512_p9 = scmp.lt.s32.totalorder %s320_s11, %s320_s11 }
  0x95   :  { %374 = vmatpush1.bf16.msra.mxu0 %v373_v45  ;;  %v387_v51 = vpack.c.bf16 %v66_v46, %v54_v42  ;;  %p508_p8 = scmp.ne.s32.totalorder %s320_s11, %s507_s12  ;;  %p513_p10 = scmp.lt.s32.totalorder %s507_s12, %s507_s12 }
  0x96   :  { %v79_v52 = vsel %vm77_vm4, %v446_v50, %v447_v49  ;;  %v91_v53 = vsel %vm89_vm5, %v451_v48, %v452_v47 }
  0x97   :  { %388 = vmatprep.subr.bf16.mxu1 %v387_v51  ;;  %v460_v54 = vpop.permute.xlu1 %459  ;;  %v455_v55 = vpop.permute.xlu0 %454  ;;  %v375_v56 = vpack.c.bf16 %v91_v53, %v79_v52  ;;  %p514_p11 = por %p513_p10, %p512_p9 }
  0x98   :  { %390 = vmatpush3.bf16.msra.mxu1 %v387_v51  ;;  %v462_v57 = vunpack.i.h.bf16 %v460_v54  ;;  %v461_v58 = vunpack.i.l.bf16 %v460_v54  ;;  %v457_v59 = vunpack.i.h.bf16 %v455_v55  ;;  %v456_v60 = vunpack.i.l.bf16 %v455_v55 }
  0x99   :  { %376 = vmatprep.subr.bf16.mxu0 %v375_v56  ;;  %p515_p12 = pnand %p514_p11, %p508_p8 }
  0x9a   :  { %v80_v61 = vsel %vm77_vm4, %v456_v60, %v446_v50  ;;  %v92_v62 = vsel %vm89_vm5, %v461_v58, %v451_v48  ;;  %v78_v63 = vsel %vm77_vm4, %v447_v49, %v457_v59  ;;  %v90_v0 = vsel %vm89_vm5, %v452_v47, %v462_v57 }
  0x9b   :  { %v470_v1 = vpop.permute.xlu1 %469  ;;  %v465_v2 = vpop.permute.xlu0 %464  ;;  %v377_v3 = vpack.c.bf16 %v92_v62, %v80_v61  ;;  %v391_v4 = vpack.c.bf16 %v90_v0, %v78_v63 }
  0x9c   :  { %v472_v5 = vunpack.i.h.bf16 %v470_v1  ;;  %v471_v8 = vunpack.i.l.bf16 %v470_v1  ;;  %v467_v9 = vunpack.i.h.bf16 %v465_v2  ;;  %v466_v10 = vunpack.i.l.bf16 %v465_v2 }
  0x9d   :  { %378 = vmatpush1.bf16.msra.mxu0 %v377_v3  ;;  %392 = vmatprep.subr.bf16.mxu1 %v391_v4 }
  0x9e   :  { %394 = vmatpush3.bf16.msra.mxu1 %v391_v4  ;;  %v103_v11 = vsel %vm101_vm6, %v466_v10, %v467_v9  ;;  %v115_v13 = vsel %vm113_vm7, %v471_v8, %v472_v5 }
  0x9f   :  { %v480_v14 = vpop.permute.xlu1 %479  ;;  %v475_v15 = vpop.permute.xlu0 %474  ;;  %v379_v16 = vpack.c.bf16 %v115_v13, %v103_v11 }
  0xa0   :  { %v482_v17 = vunpack.i.h.bf16 %v480_v14  ;;  %v481_v18 = vunpack.i.l.bf16 %v480_v14  ;;  %v477_v19 = vunpack.i.h.bf16 %v475_v15  ;;  %v476_v20 = vunpack.i.l.bf16 %v475_v15 }
  0xa1   :  { %380 = vmatprep.subr.bf16.mxu0 %v379_v16 }
  0xa2   :  { %v104_v21 = vsel %vm101_vm6, %v476_v20, %v466_v10  ;;  %v116_v22 = vsel %vm113_vm7, %v481_v18, %v471_v8  ;;  %v102_v23 = vsel %vm101_vm6, %v467_v9, %v477_v19  ;;  %v114_v24 = vsel %vm113_vm7, %v472_v5, %v482_v17 }
  0xa3   :  { %v122_v25 = vpop.permute.xlu1 %121  ;;  %v120_v26 = vpop.permute.xlu0 %119  ;;  %v381_v27 = vpack.c.bf16 %v116_v22, %v104_v21  ;;  %v395_v28 = vpack.c.bf16 %v114_v24, %v102_v23 }
  0xa4   :  { %v127_v29 = vsel %vm125_vm8, %v120_v26, %v122_v25 }
  0xa5   :  { %382 = vmatpush1.bf16.msra.mxu0 %v381_v27  ;;  %396 = vmatprep.subr.bf16.mxu1 %v395_v28 }
  0xa6   :  { %166 = vmatprep.subr.mxu0 %v127_v29  ;;  %398 = vmatpush3.bf16.msra.mxu1 %v395_v28 }
  0xa7   :  { %v124_v30 = vpop.permute.xlu1 %123  ;;  %v118_v31 = vpop.permute.xlu0 %117 }
  0xa8   :  { %v128_v32 = vsel %vm125_vm8, %v118_v31, %v120_v26  ;;  %v126_v33 = vsel %vm125_vm8, %v122_v25, %v124_v30 }
  0xa9   :  { %167 = vmatpush1.msra.mxu0 %v128_v32  ;;  %362 = vmatprep.subr.mxu1 %v126_v33 }
  0xaa   :  { %331 = vmatmul.mubr.msk.f32.vlgmr.msra.gmra.mrb[0].mxu0 %vm143_vm0, %v591_v6  ;;  %363 = vmatpush3.msra.mxu1 %v126_v33 }
  0xab   :  { %220 = vmatprep.mubr.f32.mxu0 %v541_v7  ;;  %365 = vmatmul.mubr.msk.f32.vlgmr.msra.gmra.mrb[0].mxu1 %vm143_vm0, %v130_v34 }
  0xae   :  { %332 = vmatmul.mubr.msk.f32.gmra.mrb[2].mxu0 %vm143_vm0, %v130_v34 }
  0xb8   :  { %v136_v35 = vpop.permute.xlu0 %135  ;;  %v141_v36 = vpop.permute.xlu1 %140 }
 0x17d   :  { %v216_v12 = vpop.f32.mrb[0].mxu0 }
 0x17e   :  { %v217_v37 = vadd.f32 %v216_v12, %v136_v35  ;;  %v218_v38 = vpop.f32.mrb[1].mxu0  ;;  %v366_v39 = vpop.f32.mrb[0].mxu1 }
 0x17f   :  { %v219_v40 = vadd.f32 %v218_v38, %v136_v35  ;;  %v299_v41 = vadd.f32 %v366_v39, %v141_v36  ;;  %v293_v42 = vpop.f32.mrb[1].mxu1 }
 0x180   :  { %v302_v43 = vmax.f32 %v217_v37, 0.0  ;;  %v294_v44 = vadd.f32 %v293_v42, %v136_v35 }
 0x181   :  { %v303_v45 = vmax.f32 %v219_v40, 0.0  ;;  %v307_v6 = vmax.f32 %v299_v41, 0.0  ;;  %v222_v46 = vpop.f32.mrb[2].mxu0 }
 0x182   :  { %308 = vst [vmem:[#allocation5] sm:$0xff] %v302_v43  ;;  %v223_v7 = vadd.f32 %v222_v46, %v141_v36  ;;  %v304_v47 = vmax.f32 %v294_v44, 0.0  ;;  %v224_v48 = vpop.f32.mrb[3].mxu0 }
 0x183   :  { %309 = vst [vmem:[#allocation5 + $0x8] sm:$0xff] %v303_v45  ;;  %313 = vst [vmem:[#allocation5 + $0x28] sm:$0xff] %v307_v6  ;;  %v225_v49 = vadd.f32 %v224_v48, %v141_v36 }
 0x184   :  { %v305_v50 = vmax.f32 %v223_v7, 0.0  ;;  %310 = vst [vmem:[#allocation5 + $0x10] sm:$0xff] %v304_v47 }
 0x185   :  { %v306_v51 = vmax.f32 %v225_v49, 0.0 }
 0x186   :  { %311 = vst [vmem:[#allocation5 + $0x18] sm:$0xff] %v305_v50 }
 0x187   :  { %312 = vst [vmem:[#allocation5 + $0x20] sm:$0xff] %v306_v51 }
 0x188   :  { %518 = shalt.err (!%p515_p12)
}
 0x189   :  { %s519_s15 = scalar_lea.hbm %s689_s3, 768 }
 0x18a   :  { %p520_p13 = scmp.ne.s32.totalorder %s689_s3, %s519_s15  ;;  %p523_p0 = scmp.lt.u32.totalorder %s519_s15, %s689_s3 }
 0x18c   :  { %p525_p1 = pnand %p523_p0, %p520_p13 }
 0x18e   :  { %528 = shalt.err (!%p525_p1)
}
 0x18f   :  { %s545_s20 = smov 384   ;;  %s546_s21 = smov 24  }
 0x190   :  { %325 = dma.vmem_to_hbm [thread:$0]  %s320_s11, 768, %s689_s3, [#allocation4], %s545_s20, %s545_s20, %s546_s21  }
 0x191   :  { %531 = dma.done.wait [#allocation4], 768  }
 0x192   :  { %532 = vsyncadd [#allocation4], 4294966528 }
 0x193   :  { %329 = vsyncpa [#allocation3], 1 }
 0x194   :  { %330 = vsyncpa [#allocation4], 1 }

</bundles_post_ra>
